<compile_context>
chip_gen: v7x
topology: tpu7x:2x2x1
jax: 0.10.0
libtpu: 0.0.40
codegen_flags: <defaults>
</compile_context>

<pallas_src>
import jax
import jax.numpy as jnp
from jax.experimental import pallas as pl
from jax.experimental.pallas import tpu as pltpu


def _shortcut_kernel(inp_ref, out_ref, w_ref, shift_ref, res_ref):
    # inp_ref:   (1, ni, TL)  current (batch, L-tile) of `inp`
    # out_ref:   (1, nf, TL)  current (batch, L-tile) of `out`
    # w_ref:     (nf, ni)     conv weight with BN scale folded in
    # shift_ref: (nf, 1)      beta - gamma * running_mean / sqrt(running_var + eps)
    x = inp_ref[0]                                                     # (ni, TL)
    conv = jnp.dot(w_ref[...], x, preferred_element_type=jnp.float32)  # (nf, TL)
    y = conv + shift_ref[...]                                          # folded BN (eval)
    res = jnp.maximum(out_ref[0].astype(jnp.float32) + y, 0.0)         # out + bn(conv), ReLU
    res_ref[0] = res.astype(res_ref.dtype)


def _round_up(x, m):
    return ((x + m - 1) // m) * m


def shortcut1d(inp, out, weight, gamma, beta, running_mean, running_var,
               eps=1e-5, tl=512):
    """inp: (B, ni, L), out: (B, nf, L), weight: (nf, ni, 1) -> (B, nf, L)."""
    B, ni, L = inp.shape
    _, nf, _ = out.shape

    # Fold eval-mode BatchNorm into the 1x1 conv weight + a per-channel shift.
    inv_std = jax.lax.rsqrt(running_var.astype(jnp.float32) + eps)
    scale = gamma.astype(jnp.float32) * inv_std                            # (nf,)
    shift = (beta.astype(jnp.float32)
             - running_mean.astype(jnp.float32) * scale).reshape(nf, 1)    # (nf, 1)
    w = weight.reshape(nf, ni).astype(jnp.float32) * scale[:, None]        # (nf, ni)
    # Keep matmul operands in the input dtype (bf16 stays bf16); MXU accumulates
    # in f32 via preferred_element_type.
    w = w.astype(inp.dtype)

    # Tile the length axis with lane-dense blocks (multiple of 128); pad remainder.
    tl = max(128, _round_up(tl, 128))
    TL = min(tl, _round_up(L, 128))
    Lp = _round_up(L, TL)
    if Lp != L:
        pad = ((0, 0), (0, 0), (0, Lp - L))
        inp = jnp.pad(inp, pad)
        out = jnp.pad(out, pad)
    num_l = Lp // TL

    in_bytes = jnp.dtype(inp.dtype).itemsize
    out_bytes = jnp.dtype(out.dtype).itemsize
    cost = pl.CostEstimate(
        flops=2 * B * nf * ni * Lp,
        transcendentals=0,
        bytes_accessed=(B * ni * Lp * in_bytes
                        + 2 * B * nf * Lp * out_bytes
                        + nf * ni * jnp.dtype(w.dtype).itemsize),
    )

    res = pl.pallas_call(
        _shortcut_kernel,
        out_shape=jax.ShapeDtypeStruct((B, nf, Lp), out.dtype),
        grid_spec=pltpu.PrefetchScalarGridSpec(
            num_scalar_prefetch=0,
            grid=(B, num_l),
            in_specs=[
                pl.BlockSpec((1, ni, TL), lambda b, l: (b, 0, l)),
                pl.BlockSpec((1, nf, TL), lambda b, l: (b, 0, l)),
                pl.BlockSpec((nf, ni), lambda b, l: (0, 0)),   # pinned across grid
                pl.BlockSpec((nf, 1), lambda b, l: (0, 0)),    # pinned across grid
            ],
            out_specs=pl.BlockSpec((1, nf, TL), lambda b, l: (b, 0, l)),
        ),
        compiler_params=pltpu.CompilerParams(
            dimension_semantics=("parallel", "parallel")),
        input_output_aliases={1: 0},   # reuse the `out` buffer for the result
        cost_estimate=cost,
    )(inp, out, w, shift)

    if Lp != L:
        res = res[:, :, :L]
    return res


def _reference(inp, out, weight, gamma, beta, running_mean, running_var, eps=1e-5):
    w = weight.reshape(weight.shape[0], weight.shape[1])
    conv = jnp.einsum("fc,bcl->bfl", w, inp)
    inv_std = jax.lax.rsqrt(running_var + eps)
    bn = (conv - running_mean[None, :, None]) * inv_std[None, :, None] \
         * gamma[None, :, None] + beta[None, :, None]
    return jnp.maximum(out + bn, 0.0)


if __name__ == "__main__":
    def make_case(key, B, ni, nf, L):
        k_inp, k_out, k_w, k_g, k_b, k_m, k_v = jax.random.split(key, 7)
        inp = jax.random.normal(k_inp, (B, ni, L), dtype=jnp.float32)
        out = jax.random.normal(k_out, (B, nf, L), dtype=jnp.float32)
        weight = jax.random.normal(k_w, (nf, ni, 1), dtype=jnp.float32) * 0.5
        gamma = 1.0 + 0.1 * jax.random.normal(k_g, (nf,), dtype=jnp.float32)
        beta = 0.1 * jax.random.normal(k_b, (nf,), dtype=jnp.float32)
        running_mean = 0.1 * jax.random.normal(k_m, (nf,), dtype=jnp.float32)
        running_var = jnp.abs(
            1.0 + 0.1 * jax.random.normal(k_v, (nf,), dtype=jnp.float32))
        return inp, out, weight, gamma, beta, running_mean, running_var

    key = jax.random.PRNGKey(0)
    k0, k1 = jax.random.split(key)

    # Primary small case.
    args = make_case(k0, B=2, ni=4, nf=8, L=16)
    res = jax.block_until_ready(shortcut1d(*args))
    ref = _reference(*args)
    assert res.shape == ref.shape
    assert jnp.allclose(res, ref, atol=1e-5, rtol=1e-5)

    # Exercise the L-tiling + remainder-padding path (L not a multiple of TL).
    args2 = make_case(k1, B=2, ni=4, nf=8, L=200)
    res2 = jax.block_until_ready(shortcut1d(*args2, tl=128))
    ref2 = _reference(*args2)
    assert res2.shape == ref2.shape
    assert jnp.allclose(res2, ref2, atol=1e-5, rtol=1e-5)

    print("KERNEL_OK")
</pallas_src>

<mosaic_0001>
module attributes {stable_mosaic.version = 11 : i64} {
  func.func @_shortcut_kernel(%arg0: i32, %arg1: i32, %arg2: memref<1x4x128xf32, #tpu.memory_space<vmem>>, %arg3: memref<1x8x128xf32, #tpu.memory_space<vmem>>, %arg4: memref<8x4xf32, #tpu.memory_space<vmem>>, %arg5: memref<8x1xf32, #tpu.memory_space<vmem>>, %arg6: memref<1x8x128xf32, #tpu.memory_space<vmem>>) attributes {dimension_semantics = [#tpu.dimension_semantics<parallel>, #tpu.dimension_semantics<parallel>], iteration_bounds = array<i64: 2, 1>, scalar_prefetch = 0 : i64, scratch_operands = 0 : i64, tpu.core_type = #tpu.core_type<tc>, window_params = [{transform_indices = @transform_0, window_bounds = array<i64: 1, 4, 128>}, {transform_indices = @transform_1, window_bounds = array<i64: 1, 8, 128>}, {pipeline_mode = #tpu.pipeline_mode<synchronous>, transform_indices = @transform_2, window_bounds = array<i64: 8, 4>}, {pipeline_mode = #tpu.pipeline_mode<synchronous>, transform_indices = @transform_3, window_bounds = array<i64: 8, 1>}, {transform_indices = @transform_4, window_bounds = array<i64: 1, 8, 128>}]} {
    %c0 = arith.constant 0 : index
    %c0_0 = arith.constant 0 : index
    %c0_1 = arith.constant 0 : index
    %0 = vector.load %arg2[%c0, %c0_0, %c0_1] : memref<1x4x128xf32, #tpu.memory_space<vmem>>, vector<1x4x128xf32>
    %1 = vector.shape_cast %0 : vector<1x4x128xf32> to vector<4x128xf32>
    %c0_2 = arith.constant 0 : index
    %c0_3 = arith.constant 0 : index
    %2 = vector.load %arg4[%c0_2, %c0_3] : memref<8x4xf32, #tpu.memory_space<vmem>>, vector<8x4xf32>
    %cst = arith.constant dense<0.000000e+00> : vector<8x128xf32>
    %3 = tpu.matmul %2, %1, %cst {dimension_numbers = #tpu.dot_dimension_numbers<[1], [0], [0], [1], [0, 0, 1, 1], [], []>} : vector<8x4xf32>, vector<4x128xf32>, vector<8x128xf32> -> vector<8x128xf32>
    %c0_4 = arith.constant 0 : index
    %c0_5 = arith.constant 0 : index
    %4 = vector.load %arg5[%c0_4, %c0_5] : memref<8x1xf32, #tpu.memory_space<vmem>>, vector<8x1xf32>
    %5 = vector.broadcast %4 : vector<8x1xf32> to vector<8x128xf32>
    %6 = arith.addf %3, %5 : vector<8x128xf32>
    %c0_6 = arith.constant 0 : index
    %c0_7 = arith.constant 0 : index
    %c0_8 = arith.constant 0 : index
    %7 = vector.load %arg3[%c0_6, %c0_7, %c0_8] : memref<1x8x128xf32, #tpu.memory_space<vmem>>, vector<1x8x128xf32>
    %8 = vector.shape_cast %7 : vector<1x8x128xf32> to vector<8x128xf32>
    %9 = arith.addf %8, %6 : vector<8x128xf32>
    %cst_9 = arith.constant 0.000000e+00 : f32
    %10 = vector.broadcast %cst_9 : f32 to vector<8x128xf32>
    %11 = arith.maximumf %9, %10 : vector<8x128xf32>
    %c0_10 = arith.constant 0 : index
    %c0_11 = arith.constant 0 : index
    %c0_12 = arith.constant 0 : index
    %12 = vector.load %arg6[%c0_10, %c0_11, %c0_12] : memref<1x8x128xf32, #tpu.memory_space<vmem>>, vector<1x8x128xf32>
    %13 = vector.shape_cast %12 : vector<1x8x128xf32> to vector<8x128xf32>
    %14 = vector.shape_cast %11 : vector<8x128xf32> to vector<1x8x128xf32>
    tpu.vector_store %arg6[%c0_10, %c0_11, %c0_12], %14 {strides = array<i32>} : memref<1x8x128xf32, #tpu.memory_space<vmem>>, vector<1x8x128xf32>,
    return
  }
  func.func @transform_0(%arg0: i32, %arg1: i32) -> (i32, i32, i32) {
    %c0_i32 = arith.constant 0 : i32
    %c0_i32_0 = arith.constant 0 : i32
    return %arg0, %c0_i32, %arg1 : i32, i32, i32
  }
  func.func @transform_1(%arg0: i32, %arg1: i32) -> (i32, i32, i32) {
    %c0_i32 = arith.constant 0 : i32
    %c0_i32_0 = arith.constant 0 : i32
    return %arg0, %c0_i32, %arg1 : i32, i32, i32
  }
  func.func @transform_2(%arg0: i32, %arg1: i32) -> (i32, i32) {
    %c0_i32 = arith.constant 0 : i32
    %c0_i32_0 = arith.constant 0 : i32
    %c0_i32_1 = arith.constant 0 : i32
    return %c0_i32, %c0_i32_0 : i32, i32
  }
  func.func @transform_3(%arg0: i32, %arg1: i32) -> (i32, i32) {
    %c0_i32 = arith.constant 0 : i32
    %c0_i32_0 = arith.constant 0 : i32
    %c0_i32_1 = arith.constant 0 : i32
    return %c0_i32, %c0_i32_0 : i32, i32
  }
  func.func @transform_4(%arg0: i32, %arg1: i32) -> (i32, i32, i32) {
    %c0_i32 = arith.constant 0 : i32
    %c0_i32_0 = arith.constant 0 : i32
    return %arg0, %c0_i32, %arg1 : i32, i32, i32
  }
}

</mosaic_0001>

<bundles_post_ra>
// kernel: tpu_custom_call.1
= control target key start
LH: loop header
LB: loop body
LE: loop exit
PB: predicated region body
PF: predicated region fallthrough
CT: control target
= control target key end

     0   :  { %9 = vsyncpa [#allocation3], 0  ;;  %s874_s0 = inlined_call_operand.vmem [shape: f32[2,4,128], index: 0, kind: input, shape index: {}]   ;;  %s875_s1 = inlined_call_operand.hbm [shape: f32[2,8,128], index: 1, kind: input, shape index: {}, may-alias: {1,4}]   ;;  %s876_s2 = inlined_call_operand.vmem [shape: f32[8,4], index: 2, kind: input, shape index: {}]   ;;  %s877_s3 = inlined_call_operand.vmem [shape: f32[8,1], index: 3, kind: input, shape index: {}]   ;;  %s878_s4 = inlined_call_operand.hbm [shape: f32[2,8,128], index: 4, kind: output, shape index: {}, may-alias: {1,4}]  }
   0x1   :  { %11 = vsyncpa [#allocation3 + $0x1], 0 }
   0x2   :  { %12 = vsyncpa [#allocation4], 0 }
   0x3   :  { %14 = vsyncpa [#allocation4 + $0x1], 0  ;;  %s691_s15 = smov 0   ;;  %s693_s16 = smov 0  }
   0x4   :  { %s695_s17 = smov 0   ;;  %s697_s18 = smov 0  }
   0x5   :  { %s699_s19 = smov 0   ;;  %s701_s20 = smov 0  }
   0x6 LB: > { %s458_s21 = sadd.s32 4294967295, %s659_s20   ;;  %s459_s22 = sadd.s32 4294967294, %s659_s20   ;;  %s659_s20 = sphi %s701_s20, %s20_s20   ;;  %s655_s19 = sphi %s699_s19, %s894_s19   ;;  %s651_s18 = sphi %s697_s18, %s893_s18   ;;  %s647_s17 = sphi %s695_s17, %s892_s17   ;;  %s643_s16 = sphi %s693_s16, %s891_s16   ;;  %s639_s15 = sphi %s691_s15, %s890_s15  }
   0x7   : > { %s32_s23 = sadd.s32 1, %s655_s19  ;;  %s69_s24 = sadd.s32 1, %s647_s17 }
   0x8   : > { %p34_p0 = scmp.ge.s32.totalorder %s32_s23, 2  ;;  %p76_p1 = scmp.ne.s32.totalorder %s647_s17, %s643_s16 }
   0x9   : > { %p77_p2 = scmp.eq.s32.totalorder %s659_s20, 0  ;;  %p82_p3 = scmp.ne.s32.totalorder %s643_s16, %s639_s15 }
   0xa   : > { %s896_s23 = smov (%p34_p0, %s32_s23), 0  ;;  %p83_p5 = scmp.eq.s32.totalorder %s458_s21, 0 }
   0xb   : > { %p732_p4 = por %p77_p2, %p76_p1  ;;  %s64_s26 = ssub.s32 %s655_s19, %s896_s23 }
   0xc   : > { %p150_p6 = scmp.eq.s32.totalorder %s458_s21, 1  ;;  %p67_p7 = scmp.eq.s32.totalorder %s64_s26, 0 }
   0xd   : > { %p738_p8 = por %p83_p5, %p82_p3  ;;  %p156_p10 = scmp.eq.s32.totalorder %s459_s22, 1 }
   0xe   : > { %p742_p9 = por %p150_p6, %p76_p1  ;;  %p493_p13 = scmp.lt.s32.totalorder %s659_s20, 2 }
   0xf   : > { %s747_s29 = scalar_select %p67_p7, %s647_s17, %s69_s24  }
  0x10   : > { %s882_s28 = scalar_select %p742_p9, 1, 0 }
  0x11   : > { %p749_p11 = por %p156_p10, %p82_p3  ;;  %s192_s5 = sand.u32 1, %s647_s17  }
  0x12   : > { %s462_s6 = sshll.u32 %s192_s5, 3  ;;  %s463_s7 = sshll.u32 %s655_s19, 7 }
  0x13   : > { %s883_s30 = scalar_select %p749_p11, 1, 0 }
  0x14   : > { %s760_s10 = scalar_lea.hbm %s875_s1, %s463_s7  ;;  %s196_s11 = scalar_lea.vmem [#allocation2], %s462_s6 }
  0x15   : > { %s204_s12 = sshll.u32 %s196_s11, 4  ;;  %p766_p0 = pnand %p493_p13, %p732_p4  ;;  %s762_s12 = int_to_ptr.vmem [resolvable:$true] %s204_s12 }
  0x16   : > { %s193_s14 = scalar_lea.sflag [#allocation3], %s192_s5  ;;  %s547_s21 = scalar_lea.hbm %s760_s10, 128 }
  0x17   : > { %p548_p3 = scmp.ne.s32.totalorder %s760_s10, %s547_s21  ;;  %p549_p5 = pneg %p766_p0 }
  0x18   : > { %s552_s25 = scalar_lea.hbm %s875_s1, 256  ;;  %p553_p4 = scmp.lt.u32.totalorder %s760_s10, %s875_s1 }
  0x19   : > { %p550_p6 = pnand %p549_p5, %p548_p3  ;;  %p554_p10 = scmp.lt.u32.totalorder %s552_s25, %s547_s21 }
  0x1a   : > { %p556_p12 = scmp.lt.u32.totalorder %s547_s21, %s760_s10 }
  0x1b   : > { %p551_p7 = pneg %p550_p6  ;;  %p555_p13 = por %p554_p10, %p553_p4 }
  0x1d   : > { %p557_p1 = por %p556_p12, %p555_p13 }
  0x1f   : > { %p558_p2 = pnand %p557_p1, %p551_p7 }
  0x21   : > { %561 = shalt.err (!%p558_p2)
}
  0x22   : > { %s562_s5 = scalar_lea.vmem %s762_s12, 128  ;;  %s661_s7 = smov [#allocation2]  }
  0x23   : > { %p563_p3 = scmp.ne.s32.totalorder %s762_s12, %s562_s5  ;;  %s567_s8 = sshll.u32 %s661_s7, 4  ;;  %s568_s8 = int_to_ptr.vmem [resolvable:$false] %s567_s8 }
  0x24   : > { %s569_s9 = scalar_lea.vmem %s568_s8, 256  ;;  %p570_p9 = scmp.lt.s32.totalorder %s762_s12, %s568_s8 }
  0x25   : > { %p565_p6 = pnand %p563_p3, %p549_p5  ;;  %p571_p4 = scmp.lt.s32.totalorder %s569_s9, %s562_s5 }
  0x27   : > { %p566_p11 = pneg %p565_p6  ;;  %p572_p10 = por %p571_p4, %p570_p9 }
  0x29   : > { %p573_p12 = pnand %p572_p10, %p566_p11 }
  0x2b   : > { %576 = shalt.err (!%p573_p12)
}
  0x2c   : > { %488 = dma.hbm_to_vmem [thread:$0]  (!%p766_p0), %s760_s10, 128, %s762_s12, %s193_s14  }
  0x2d   : > { %p885_p1 = scmp.lt.s32.totalorder %s659_s20, 3  ;;  %p886_p2 = scmp.ge.s32.totalorder %s659_s20, 1 }
  0x2f   : > { %p210_p5 = pnand %p886_p2, %p885_p1 }
  0x30   : > { %s802_s11 = sand.u32 (!%p210_p5), 1, %s643_s16  }
  0x31   : > { %213 = sbr.rel (%p210_p5) target bundleno = 297 (0x129), region = 36  ;;  %s465_s21 = sshll.u32 (!%p210_p5), %s802_s11, 3 }
  0x32   : > { %s216_s22 = scalar_lea.sflag (!%p210_p5), [#allocation3], %s802_s11  ;;  %s219_s24 = scalar_lea.vmem (!%p210_p5), [#allocation2], %s465_s21 }
  0x38   : > { %630 = dma.done.wait (%p738_p8), %s216_s22, 128  }
  0x39   : > { %632 = vsyncadd (%p738_p8), %s216_s22, 4294967168  ;;  %p251_p9 = scmp.lt.s32.totalorder %s651_s18, 1  ;;  %v662_v0 = vmov 0.0   ;;  %vm663_vm0 = vmmov 0   ;;  %v664_v1 = vmov 0   ;;  %vm270_vm1 = vcmask 1043456  }
  0x3a   : > { %476 = vmatprep.subr.mxu0 %v662_v0  ;;  %478 = vmatprep.mubr.msk.f32.mxu0 %vm663_vm0, %v662_v0  ;;  %vm266_vm2 = vcmask 31744   ;;  %v259_v3 = vld [vmem:[%s876_s2] sm:$0xff]  ;;  %s471_s7 = sshll.u32 %s651_s18, 7  ;;  %s250_s8 = scalar_lea.vmem [#allocation5], %s465_s21 }
  0x3b   : > { %s252_s10 = scalar_select %p251_p9, %s651_s18, 1  ;;  %546 = vset.pattern.permute.xlu0 %v664_v1  ;;  %v260_v4 = vld [vmem:[%s877_s3] sm:$0xff] }
  0x3c   : > { %263 = vperm.xlu0 %546, %v260_v4   ;;  %v344_v7 = vld [vmem:[%s219_s24] sm:$0xff]  ;;  %s363_s9 = sshll.u32 %s250_s8, 4  ;;  %s349_s13 = scalar_lea.sflag [#allocation4], %s802_s11  ;;  %s827_s9 = int_to_ptr.vmem [resolvable:$true] %s363_s9 }
  0x3d   : > { %s467_s12 = sshll.u32 %s252_s10, 2  ;;  %s577_s24 = scalar_lea.vmem %s827_s9, 128 }
  0x3e   : > { %s257_s25 = scalar_lea.vmem %s874_s0, %s467_s12  ;;  %s825_s12 = scalar_lea.hbm %s878_s4, %s471_s7 }
  0x3f   : > { %v258_v2 = vld [vmem:[%s257_s25] sm:$0xf]  ;;  %p578_p8 = scmp.ne.s32.totalorder %s827_s9, %s577_s24  ;;  %p887_p11 = scmp.ne.s32.totalorder %s882_s28, 0 }
  0x40   : > { %477 = vmatpush3.msk.msra.mxu0 %vm270_vm1, %v258_v2  ;;  %s665_s18 = smov [#allocation5]  }
  0x41   : > { %479 = vmatmul.mubr.msk.f32.vlgmr.msra.gmra.mrb[0].mxu0 %vm266_vm2, %v259_v3  ;;  %p579_p0 = pnand %p578_p8, %p887_p11  ;;  %s581_s21 = sshll.u32 %s665_s18, 4  ;;  %s582_s21 = int_to_ptr.vmem [resolvable:$false] %s581_s21 }
  0x42   : > { %s583_s14 = scalar_lea.vmem %s582_s21, 256  ;;  %p584_p13 = scmp.lt.s32.totalorder %s827_s9, %s582_s21 }
  0x43   : > { %p580_p7 = pneg %p579_p0  ;;  %p585_p3 = scmp.lt.s32.totalorder %s583_s14, %s577_s24 }
  0x45   : > { %p586_p6 = por %p585_p3, %p584_p13 }
  0x47   : > { %p587_p4 = pnand %p586_p6, %p580_p7 }
  0xbb   : > { %v264_v5 = vpop.permute.xlu0 %263 }
 0x114   : > { %v340_v6 = vpop.f32.mrb[0].mxu0 }
 0x115   : > { %v341_v8 = vadd.f32 %v340_v6, %v264_v5  ;;  %v480_v9 = vpop.f32.mrb[1].mxu0 }
 0x117   : > { %v345_v10 = vadd.f32 %v344_v7, %v341_v8 }
 0x119   : > { %v346_v11 = vmax.f32 %v345_v10, 0.0 }
 0x11b   : > { %347 = vst [vmem:[%s250_s8] sm:$0xff] %v346_v11 }
 0x11c   : > { %590 = shalt.err (!%p587_p4)
}
 0x11d   : > { %s591_s11 = scalar_lea.hbm %s825_s12, 128  ;;  %s595_s26 = scalar_lea.hbm %s878_s4, 256 }
 0x11e   : > { %p592_p10 = scmp.ne.s32.totalorder %s825_s12, %s591_s11  ;;  %p596_p2 = scmp.lt.u32.totalorder %s825_s12, %s878_s4 }
 0x11f   : > { %p597_p5 = scmp.lt.u32.totalorder %s595_s26, %s591_s11  ;;  %p599_p8 = scmp.lt.u32.totalorder %s591_s11, %s825_s12 }
 0x120   : > { %p593_p12 = pnand %p592_p10, %p887_p11 }
 0x121   : > { %p598_p9 = por %p597_p5, %p596_p2 }
 0x122   : > { %p594_p1 = pneg %p593_p12 }
 0x123   : > { %p600_p0 = por %p599_p8, %p598_p9 }
 0x125   : > { %p601_p7 = pnand %p600_p0, %p594_p1 }
 0x127   : > { %604 = shalt.err (!%p601_p7)
}
 0x128   : > { %483 = dma.vmem_to_hbm [thread:$0]  (%p887_p11), %s827_s9, 128, %s825_s12, %s349_s13  }
 0x129 PF: > { %s375_s7 = sand.u32 1, %s639_s15   ;;  %p888_p13 = scmp.ne.s32.totalorder %s883_s30, 0 }
 0x12a   : > { %p889_p3 = scmp.ge.s32.totalorder %s659_s20, 2  ;;  %s376_s8 = scalar_lea.sflag [#allocation4], %s375_s7 }
 0x12c   : > { %p490_p6 = pnand %p889_p3, %p888_p13 }
 0x12e   : > { %634 = dma.done.wait (!%p490_p6), %s376_s8, 128  }
 0x12f   : > { %636 = vsyncadd (!%p490_p6), %s376_s8, 4294967168  ;;  %s20_s20 = sadd.s32 1, %s659_s20   ;;  %s890_s15 = smov %s643_s16 }
 0x130   : > { %p17_p4 = scmp.ge.s32.totalorder %s20_s20, 4   ;;  %s891_s16 = smov %s647_s17 }
 0x131   : > { %s892_s17 = smov %s747_s29  ;;  %s893_s18 = smov %s655_s19 }
 0x132   : > { %s894_s19 = smov %s896_s23  ;;  %19 = sbr.rel (!%p17_p4) target bundleno = 6 (0x6), region = 84 }
 0x139   :  { %381 = vsyncpa [#allocation3], 1 }
 0x13a   :  { %383 = vsyncpa [#allocation3 + $0x1], 1 }
 0x13b   :  { %384 = vsyncpa [#allocation4], 1 }
 0x13c   :  { %386 = vsyncpa [#allocation4 + $0x1], 1 }

</bundles_post_ra>
